<compile_context>
chip_gen: v6e
topology: v6e:2x2x1
jax: 0.10.0
libtpu: 0.0.40
codegen_flags: <defaults>
</compile_context>

<pallas_src>
import jax
import jax.numpy as jnp
from jax.experimental import pallas as pl
from jax.experimental.pallas import tpu as pltpu

BN_EPS = 1e-5
LANE = 128        # vreg lane width
ROW_GRAN = 16     # batch-tile granularity (bf16 sublane packing friendly)


def _round_up(n, m):
    return ((n + m - 1) // m) * m


# ---------------------------------------------------------------------------
# Kernel body: dot -> +b1 -> ReLU -> dot -> +b2'   (BatchNorm folded into W2'/b2')
# ---------------------------------------------------------------------------
def mlp_bis_kernel(x_ref, w1_ref, b1_ref, w2_ref, b2_ref, o_ref):
    # x arrives as f32 straight from HBM (no wrapper pre-pass); cast to bf16
    # on the VPU right before feeding the MXU.
    x = x_ref[...].astype(jnp.bfloat16)
    h = jnp.dot(x, w1_ref[...], preferred_element_type=jnp.float32)
    # Dropout (eval mode) -> identity.
    # TODO(synk): training-mode stochastic dropout intentionally omitted.
    h = jnp.maximum(h + b1_ref[...], 0.0)            # bias + ReLU in f32 (v5e-safe)
    y = jnp.dot(h.astype(jnp.bfloat16), w2_ref[...],
                preferred_element_type=jnp.float32)
    o_ref[...] = (y + b2_ref[...]).astype(o_ref.dtype)


# ---------------------------------------------------------------------------
# One-time parameter preparation (hoisted out of the per-call path):
#   * fold eval-mode BatchNorm1d into Linear2:
#       s = gamma * rsqrt(var + eps);  t = beta - mean * s
#       W2' = s^T * W2;                b2' = t @ W2 + b2
#   * pad the hidden dim to the 128-lane vreg width (padded lanes are exact
#     zeros, so they contribute nothing to the second matmul),
#   * cast matmul operands to bf16; biases stay f32.
# ---------------------------------------------------------------------------
def prepare_params(params):
    w1, b1, gamma, beta, running_mean, running_var, w2, b2 = params
    D_in, H = w1.shape
    O = w2.shape[1]

    s = gamma * jax.lax.rsqrt(running_var + BN_EPS)   # (1, H)
    t = beta - running_mean * s                       # (1, H)
    w2f = s.T * w2                                    # (H, O)
    b2f = t @ w2 + b2                                 # (1, O)

    H_pad = _round_up(H, LANE)
    w1_p = jnp.zeros((D_in, H_pad), jnp.bfloat16).at[:, :H].set(
        w1.astype(jnp.bfloat16))
    b1_p = jnp.zeros((1, H_pad), jnp.float32).at[:, :H].set(b1)
    w2_p = jnp.zeros((H_pad, O), jnp.bfloat16).at[:H, :].set(
        w2f.astype(jnp.bfloat16))
    b2_p = b2f.astype(jnp.float32)
    return (w1_p, b1_p, w2_p, b2_p)


def _choose_batch_tile(B, batch_tile):
    tb = min(batch_tile, _round_up(B, 8))
    # v7x has 2 TensorCores: make sure the "parallel" batch axis has >= 2 grid
    # steps whenever the batch is big enough to split.
    if B > 2 * ROW_GRAN and pl.cdiv(B, tb) < 2:
        tb = _round_up(pl.cdiv(B, 2), ROW_GRAN)
    return tb


def _weight_spec(shape, single_buffer):
    idx = lambda i: (0, 0)
    if single_buffer and hasattr(pl, "Buffered"):
        # Constant index_map -> the block never changes; one VMEM buffer is
        # enough (halves resident-weight footprint, important on v7x 64 MiB).
        return pl.BlockSpec(shape, idx, pipeline_mode=pl.Buffered(1))
    return pl.BlockSpec(shape, idx)


def _run(x, prepared, tb, single_buffer):
    w1_p, b1_p, w2_p, b2_p = prepared
    B, D_in = x.shape
    H_pad = w1_p.shape[1]
    O = w2_p.shape[1]
    grid = (pl.cdiv(B, tb),)

    weight_bytes = (w1_p.size * 2 + b1_p.size * 4 + w2_p.size * 2 + b2_p.size * 4)
    io_tile_bytes = tb * D_in * 4 + tb * O * 4        # one x tile + one out tile
    interm_bytes = tb * H_pad * (4 + 2)               # f32 h + its bf16 copy
    vmem_limit = int(1.5 * (2 * weight_bytes + 2 * io_tile_bytes + interm_bytes))
    vmem_limit = min(max(vmem_limit, 4 << 20), 64 << 20)

    flops = 2 * B * (D_in * H_pad + H_pad * O)
    bytes_accessed = x.size * 4 + weight_bytes + B * O * 4

    return pl.pallas_call(
        mlp_bis_kernel,
        out_shape=jax.ShapeDtypeStruct((B, O), jnp.float32),
        grid=grid,
        in_specs=[
            pl.BlockSpec((tb, D_in), lambda i: (i, 0)),   # x tile (pipelined)
            _weight_spec((D_in, H_pad), single_buffer),   # W1  (resident)
            _weight_spec((1, H_pad), single_buffer),      # b1  (resident)
            _weight_spec((H_pad, O), single_buffer),      # W2' (BN folded)
            _weight_spec((1, O), single_buffer),          # b2' (BN folded)
        ],
        out_specs=pl.BlockSpec((tb, O), lambda i: (i, 0)),
        compiler_params=pltpu.CompilerParams(
            dimension_semantics=("parallel",),
            vmem_limit_bytes=vmem_limit),
        cost_estimate=pl.CostEstimate(
            flops=flops, transcendentals=0, bytes_accessed=bytes_accessed),
    )(x, w1_p, b1_p, w2_p, b2_p)


def mlp_bis_forward(x, prepared, *, batch_tile=256):
    """Fused eval-mode forward. x: (B, input_dim) float32 (unpadded)."""
    tb = _choose_batch_tile(x.shape[0], batch_tile)
    try:
        return _run(x, prepared, tb, single_buffer=True)
    except Exception:
        # Fallback if this JAX build rejects pl.Buffered(1) on resident weights.
        return _run(x, prepared, tb, single_buffer=False)


# ---------------------------------------------------------------------------
# Synthetic parameters / references
# ---------------------------------------------------------------------------
def init_params(key, input_dim, hidden_dim, output_dim):
    """Deterministic synthetic parameters (shapes match the torch module)."""
    k1, k2, k3, k4, k5, k6, k7, k8 = jax.random.split(key, 8)
    # nn.Linear weights stored pre-transposed as (in, out).
    w1 = jax.random.normal(k1, (input_dim, hidden_dim), jnp.float32) * 0.1
    b1 = jax.random.normal(k2, (1, hidden_dim), jnp.float32) * 0.1
    gamma = 1.0 + 0.1 * jax.random.normal(k3, (1, hidden_dim), jnp.float32)
    beta = 0.1 * jax.random.normal(k4, (1, hidden_dim), jnp.float32)
    running_mean = 0.1 * jax.random.normal(k5, (1, hidden_dim), jnp.float32)
    running_var = 1.0 + 0.1 * jax.random.uniform(k6, (1, hidden_dim), jnp.float32)
    w2 = jax.random.normal(k7, (hidden_dim, output_dim), jnp.float32) * 0.1
    b2 = jax.random.normal(k8, (1, output_dim), jnp.float32) * 0.1
    return (w1, b1, gamma, beta, running_mean, running_var, w2, b2)


def reference_forward(x, params):
    """Plain-JAX f32 reference with the original (un-folded) eval-mode math."""
    w1, b1, gamma, beta, running_mean, running_var, w2, b2 = params
    h = x @ w1 + b1
    h = jnp.maximum(h, 0.0)
    h = (h - running_mean) * jax.lax.rsqrt(running_var + BN_EPS) * gamma + beta
    return h @ w2 + b2


def reference_forward_matched(x, params):
    """Plain-JAX reference mirroring the kernel's BN-fold + bf16 casting."""
    w1, b1, gamma, beta, running_mean, running_var, w2, b2 = params
    s = gamma * jax.lax.rsqrt(running_var + BN_EPS)
    t = beta - running_mean * s
    w2f = (s.T * w2).astype(jnp.bfloat16)
    b2f = t @ w2 + b2
    h = jnp.dot(x.astype(jnp.bfloat16), w1.astype(jnp.bfloat16),
                preferred_element_type=jnp.float32) + b1
    h = jnp.maximum(h, 0.0)
    return jnp.dot(h.astype(jnp.bfloat16), w2f,
                   preferred_element_type=jnp.float32) + b2f


def _check(key, batch, input_dim, hidden_dim, output_dim, batch_tile=256):
    kx, kp = jax.random.split(key)
    x = jax.random.normal(kx, (batch, input_dim), jnp.float32)
    params = init_params(kp, input_dim, hidden_dim, output_dim)
    prepared = prepare_params(params)

    out = jax.block_until_ready(
        mlp_bis_forward(x, prepared, batch_tile=batch_tile))
    assert out.shape == (batch, output_dim)

    # Tight check vs. a precision-matched (BN-folded, bf16-operand) reference.
    ref_matched = reference_forward_matched(x, params)
    assert jnp.allclose(out, ref_matched, atol=2e-3, rtol=2e-3), \
        "mismatch vs precision-matched reference"

    # Semantic check vs. full-f32 eval-mode reference (bf16 quantization slack).
    ref_f32 = reference_forward(x, params)
    assert jnp.allclose(out, ref_f32, atol=3e-2, rtol=3e-2), \
        "mismatch vs f32 reference"


if __name__ == "__main__":
    key = jax.random.PRNGKey(0)
    k1, k2 = jax.random.split(key)
    # Small shapes matching the module spec.
    _check(k1, batch=8, input_dim=16, hidden_dim=32, output_dim=4)
    # Ragged batch: exercises the partial last block and the 2-step parallel grid.
    _check(k2, batch=200, input_dim=24, hidden_dim=48, output_dim=3)
    print("KERNEL_OK")
</pallas_src>

<mosaic_0001>
module attributes {stable_mosaic.version = 11 : i64} {
  func.func @mlp_bis_kernel(%arg0: i32, %arg1: memref<8x16xf32, #tpu.memory_space<vmem>>, %arg2: memref<16x128xbf16, #tpu.memory_space<vmem>>, %arg3: memref<1x128xf32, #tpu.memory_space<vmem>>, %arg4: memref<128x4xbf16, #tpu.memory_space<vmem>>, %arg5: memref<1x4xf32, #tpu.memory_space<vmem>>, %arg6: memref<8x4xf32, #tpu.memory_space<vmem>>) attributes {dimension_semantics = [#tpu.dimension_semantics<parallel>], iteration_bounds = array<i64: 1>, scalar_prefetch = 0 : i64, scratch_operands = 0 : i64, tpu.core_type = #tpu.core_type<tc>, window_params = [{transform_indices = @transform_0, window_bounds = array<i64: 8, 16>}, {pipeline_mode = #tpu.pipeline_mode<synchronous>, transform_indices = @transform_1, window_bounds = array<i64: 16, 128>}, {pipeline_mode = #tpu.pipeline_mode<synchronous>, transform_indices = @transform_2, window_bounds = array<i64: 1, 128>}, {pipeline_mode = #tpu.pipeline_mode<synchronous>, transform_indices = @transform_3, window_bounds = array<i64: 128, 4>}, {pipeline_mode = #tpu.pipeline_mode<synchronous>, transform_indices = @transform_4, window_bounds = array<i64: 1, 4>}, {transform_indices = @transform_5, window_bounds = array<i64: 8, 4>}]} {
    %c0 = arith.constant 0 : index
    %c0_0 = arith.constant 0 : index
    %0 = vector.load %arg1[%c0, %c0_0] : memref<8x16xf32, #tpu.memory_space<vmem>>, vector<8x16xf32>
    %1 = arith.truncf %0 : vector<8x16xf32> to vector<8x16xbf16>
    %c0_1 = arith.constant 0 : index
    %c0_2 = arith.constant 0 : index
    %2 = vector.load %arg2[%c0_1, %c0_2] : memref<16x128xbf16, #tpu.memory_space<vmem>>, vector<16x128xbf16>
    %cst = arith.constant dense<0.000000e+00> : vector<8x128xf32>
    %3 = tpu.matmul %1, %2, %cst {dimension_numbers = #tpu.dot_dimension_numbers<[1], [0], [0], [1], [0, 0, 1, 1], [], []>} : vector<8x16xbf16>, vector<16x128xbf16>, vector<8x128xf32> -> vector<8x128xf32>
    %c0_3 = arith.constant 0 : index
    %c0_4 = arith.constant 0 : index
    %4 = vector.load %arg3[%c0_3, %c0_4] : memref<1x128xf32, #tpu.memory_space<vmem>>, vector<1x128xf32>
    %5 = vector.broadcast %4 : vector<1x128xf32> to vector<8x128xf32>
    %6 = arith.addf %3, %5 : vector<8x128xf32>
    %cst_5 = arith.constant 0.000000e+00 : f32
    %7 = vector.broadcast %cst_5 : f32 to vector<8x128xf32>
    %8 = arith.maximumf %6, %7 : vector<8x128xf32>
    %9 = arith.truncf %8 : vector<8x128xf32> to vector<8x128xbf16>
    %c0_6 = arith.constant 0 : index
    %c0_7 = arith.constant 0 : index
    %10 = vector.load %arg4[%c0_6, %c0_7] : memref<128x4xbf16, #tpu.memory_space<vmem>>, vector<128x4xbf16>
    %cst_8 = arith.constant dense<0.000000e+00> : vector<8x4xf32>
    %11 = tpu.matmul %9, %10, %cst_8 {dimension_numbers = #tpu.dot_dimension_numbers<[1], [0], [0], [1], [0, 0, 1, 1], [], []>} : vector<8x128xbf16>, vector<128x4xbf16>, vector<8x4xf32> -> vector<8x4xf32>
    %c0_9 = arith.constant 0 : index
    %c0_10 = arith.constant 0 : index
    %12 = vector.load %arg5[%c0_9, %c0_10] : memref<1x4xf32, #tpu.memory_space<vmem>>, vector<1x4xf32>
    %13 = vector.broadcast %12 : vector<1x4xf32> to vector<8x4xf32>
    %14 = arith.addf %11, %13 : vector<8x4xf32>
    %c0_11 = arith.constant 0 : index
    %c0_12 = arith.constant 0 : index
    %15 = vector.load %arg6[%c0_11, %c0_12] : memref<8x4xf32, #tpu.memory_space<vmem>>, vector<8x4xf32>
    tpu.vector_store %arg6[%c0_11, %c0_12], %14 {strides = array<i32>} : memref<8x4xf32, #tpu.memory_space<vmem>>, vector<8x4xf32>,
    return
  }
  func.func @transform_0(%arg0: i32) -> (i32, i32) {
    %c0_i32 = arith.constant 0 : i32
    %c0_i32_0 = arith.constant 0 : i32
    return %arg0, %c0_i32 : i32, i32
  }
  func.func @transform_1(%arg0: i32) -> (i32, i32) {
    %c0_i32 = arith.constant 0 : i32
    %c0_i32_0 = arith.constant 0 : i32
    %c0_i32_1 = arith.constant 0 : i32
    return %c0_i32, %c0_i32_0 : i32, i32
  }
  func.func @transform_2(%arg0: i32) -> (i32, i32) {
    %c0_i32 = arith.constant 0 : i32
    %c0_i32_0 = arith.constant 0 : i32
    %c0_i32_1 = arith.constant 0 : i32
    return %c0_i32, %c0_i32_0 : i32, i32
  }
  func.func @transform_3(%arg0: i32) -> (i32, i32) {
    %c0_i32 = arith.constant 0 : i32
    %c0_i32_0 = arith.constant 0 : i32
    %c0_i32_1 = arith.constant 0 : i32
    return %c0_i32, %c0_i32_0 : i32, i32
  }
  func.func @transform_4(%arg0: i32) -> (i32, i32) {
    %c0_i32 = arith.constant 0 : i32
    %c0_i32_0 = arith.constant 0 : i32
    %c0_i32_1 = arith.constant 0 : i32
    return %c0_i32, %c0_i32_0 : i32, i32
  }
  func.func @transform_5(%arg0: i32) -> (i32, i32) {
    %c0_i32 = arith.constant 0 : i32
    %c0_i32_0 = arith.constant 0 : i32
    return %arg0, %c0_i32 : i32, i32
  }
}

module attributes {stable_mosaic.version = 11 : i64} {
  func.func @mlp_bis_kernel(%arg0: i32, %arg1: memref<8x16xf32, #tpu.memory_space<vmem>>, %arg2: memref<16x128xbf16, #tpu.memory_space<vmem>>, %arg3: memref<1x128xf32, #tpu.memory_space<vmem>>, %arg4: memref<128x4xbf16, #tpu.memory_space<vmem>>, %arg5: memref<1x4xf32, #tpu.memory_space<vmem>>, %arg6: memref<8x4xf32, #tpu.memory_space<vmem>>) attributes {dimension_semantics = [#tpu.dimension_semantics<parallel>], iteration_bounds = array<i64: 1>, scalar_prefetch = 0 : i64, scratch_operands = 0 : i64, tpu.core_type = #tpu.core_type<tc>, window_params = [{transform_indices = @transform_0, window_bounds = array<i64: 8, 16>}, {pipeline_mode = #tpu.pipeline_mode<synchronous>, transform_indices = @transform_1, window_bounds = array<i64: 16, 128>}, {pipeline_mode = #tpu.pipeline_mode<synchronous>, transform_indices = @transform_2, window_bounds = array<i64: 1, 128>}, {pipeline_mode = #tpu.pipeline_mode<synchronous>, transform_indices = @transform_3, window_bounds = array<i64: 128, 4>}, {pipeline_mode = #tpu.pipeline_mode<synchronous>, transform_indices = @transform_4, window_bounds = array<i64: 1, 4>}, {transform_indices = @transform_5, window_bounds = array<i64: 8, 4>}]} {
    %c0 = arith.constant 0 : index
    %c0_0 = arith.constant 0 : index
    %0 = vector.load %arg1[%c0, %c0_0] : memref<8x16xf32, #tpu.memory_space<vmem>>, vector<8x16xf32>
    %1 = arith.truncf %0 : vector<8x16xf32> to vector<8x16xbf16>
    %c0_1 = arith.constant 0 : index
    %c0_2 = arith.constant 0 : index
    %2 = vector.load %arg2[%c0_1, %c0_2] : memref<16x128xbf16, #tpu.memory_space<vmem>>, vector<16x128xbf16>
    %cst = arith.constant dense<0.000000e+00> : vector<8x128xf32>
    %3 = tpu.matmul %1, %2, %cst {dimension_numbers = #tpu.dot_dimension_numbers<[1], [0], [0], [1], [0, 0, 1, 1], [], []>} : vector<8x16xbf16>, vector<16x128xbf16>, vector<8x128xf32> -> vector<8x128xf32>
    %c0_3 = arith.constant 0 : index
    %c0_4 = arith.constant 0 : index
    %4 = vector.load %arg3[%c0_3, %c0_4] : memref<1x128xf32, #tpu.memory_space<vmem>>, vector<1x128xf32>
    %5 = vector.broadcast %4 : vector<1x128xf32> to vector<8x128xf32>
    %6 = arith.addf %3, %5 : vector<8x128xf32>
    %cst_5 = arith.constant 0.000000e+00 : f32
    %7 = vector.broadcast %cst_5 : f32 to vector<8x128xf32>
    %8 = arith.maximumf %6, %7 : vector<8x128xf32>
    %9 = arith.truncf %8 : vector<8x128xf32> to vector<8x128xbf16>
    %c0_6 = arith.constant 0 : index
    %c0_7 = arith.constant 0 : index
    %10 = vector.load %arg4[%c0_6, %c0_7] : memref<128x4xbf16, #tpu.memory_space<vmem>>, vector<128x4xbf16>
    %cst_8 = arith.constant dense<0.000000e+00> : vector<8x4xf32>
    %11 = tpu.matmul %9, %10, %cst_8 {dimension_numbers = #tpu.dot_dimension_numbers<[1], [0], [0], [1], [0, 0, 1, 1], [], []>} : vector<8x128xbf16>, vector<128x4xbf16>, vector<8x4xf32> -> vector<8x4xf32>
    %c0_9 = arith.constant 0 : index
    %c0_10 = arith.constant 0 : index
    %12 = vector.load %arg5[%c0_9, %c0_10] : memref<1x4xf32, #tpu.memory_space<vmem>>, vector<1x4xf32>
    %13 = vector.broadcast %12 : vector<1x4xf32> to vector<8x4xf32>
    %14 = arith.addf %11, %13 : vector<8x4xf32>
    %c0_11 = arith.constant 0 : index
    %c0_12 = arith.constant 0 : index
    %15 = vector.load %arg6[%c0_11, %c0_12] : memref<8x4xf32, #tpu.memory_space<vmem>>, vector<8x4xf32>
    tpu.vector_store %arg6[%c0_11, %c0_12], %14 {strides = array<i32>} : memref<8x4xf32, #tpu.memory_space<vmem>>, vector<8x4xf32>,
    return
  }
  func.func @transform_0(%arg0: i32) -> (i32, i32) {
    %c0_i32 = arith.constant 0 : i32
    %c0_i32_0 = arith.constant 0 : i32
    return %arg0, %c0_i32 : i32, i32
  }
  func.func @transform_1(%arg0: i32) -> (i32, i32) {
    %c0_i32 = arith.constant 0 : i32
    %c0_i32_0 = arith.constant 0 : i32
    %c0_i32_1 = arith.constant 0 : i32
    return %c0_i32, %c0_i32_0 : i32, i32
  }
  func.func @transform_2(%arg0: i32) -> (i32, i32) {
    %c0_i32 = arith.constant 0 : i32
    %c0_i32_0 = arith.constant 0 : i32
    %c0_i32_1 = arith.constant 0 : i32
    return %c0_i32, %c0_i32_0 : i32, i32
  }
  func.func @transform_3(%arg0: i32) -> (i32, i32) {
    %c0_i32 = arith.constant 0 : i32
    %c0_i32_0 = arith.constant 0 : i32
    %c0_i32_1 = arith.constant 0 : i32
    return %c0_i32, %c0_i32_0 : i32, i32
  }
  func.func @transform_4(%arg0: i32) -> (i32, i32) {
    %c0_i32 = arith.constant 0 : i32
    %c0_i32_0 = arith.constant 0 : i32
    %c0_i32_1 = arith.constant 0 : i32
    return %c0_i32, %c0_i32_0 : i32, i32
  }
  func.func @transform_5(%arg0: i32) -> (i32, i32) {
    %c0_i32 = arith.constant 0 : i32
    %c0_i32_0 = arith.constant 0 : i32
    return %arg0, %c0_i32 : i32, i32
  }
}

</mosaic_0001>

<bundles_post_ra>
// kernel: tpu_custom_call.1
= control target key start
LH: loop header
LB: loop body
LE: loop exit
PB: predicated region body
PF: predicated region fallthrough
CT: control target
= control target key end

     0   :  { %v261_v0 = vmov 0.0   ;;  %vm262_vm0 = vmmov 0   ;;  %vm38_vm1 = vcmask 130048   ;;  %vm195_vm2 = vcmask 31744   ;;  %s332_s1 = inlined_call_operand.vmem [shape: bf16[16,128], index: 1, kind: input, shape index: {}]   ;;  %s333_s0 = inlined_call_operand.vmem [shape: f32[8,16], index: 0, kind: input, shape index: {}]   ;;  %s334_s3 = inlined_call_operand.vmem [shape: bf16[128,4], index: 3, kind: input, shape index: {}]   ;;  %s335_s2 = inlined_call_operand.vmem [shape: f32[1,128], index: 2, kind: input, shape index: {}]   ;;  %s336_s4 = inlined_call_operand.vmem [shape: f32[1,4], index: 4, kind: input, shape index: {}]   ;;  %s337_s5 = inlined_call_operand.vmem [shape: f32[8,4], index: 5, kind: output, shape index: {}]  }
   0x1   :  { %224 = vmatprep.subr.bf16.mxu0 %v261_v0  ;;  %v252_v1 = vld [vmem:[%s332_s1] sm:$0xff]   ;;  %226 = vmatprep.mubr.msk.bf16.mxu0 %vm262_vm0, %v261_v0  ;;  %v253_v4 = vld [vmem:[%s334_s3 + $0x38] sm:$0xff]   ;;  %v254_v5 = vld [vmem:[%s334_s3 + $0x30] sm:$0xff]  }
   0x2   :  { %v21_v2 = vld [vmem:[%s333_s0] sm:$0xff]  ;;  %230 = vmatprep.subr.bf16.mxu1 %v261_v0  ;;  %246 = vmatprep.mubr.msk.bf16.mxu1 %vm262_vm0, %v261_v0  ;;  %v255_v6 = vld [vmem:[%s334_s3 + $0x28] sm:$0xff]   ;;  %v257_v8 = vld [vmem:[%s334_s3 + $0x18] sm:$0xff]  }
   0x3   :  { %225 = vmatpush3.bf16.msra.mxu0 %v252_v1  ;;  %v22_v3 = vpack.c.bf16 %v21_v2, %v21_v2  ;;  %231 = vmatpush3.bf16.msra.mxu1 %v253_v4  ;;  %v256_v7 = vld [vmem:[%s334_s3 + $0x20] sm:$0xff]   ;;  %v258_v9 = vld [vmem:[%s334_s3 + $0x10] sm:$0xff]   ;;  %v259_v10 = vld [vmem:[%s334_s3 + $0x8] sm:$0xff]  }
   0x4   :  { %232 = vmatprep.subr.bf16.mxu1 %v261_v0  ;;  %v260_v11 = vld [vmem:[%s334_s3] sm:$0xff]  }
   0x5   :  { %v201_v12 = vld [vmem:[%s335_s2] ss:$0 sm:$0xff] }
   0x6   :  { %227 = vmatmul.mubr.msk.bf16.vlgmr.msra.gmra.mxu0 %vm38_vm1, %v22_v3  ;;  %v204_v20 = vld [vmem:[%s336_s4] ss:$0 sm:$0xff] }
   0x7   :  { %233 = vmatpush3.bf16.msra.mxu1 %v254_v5 }
   0x8   :  { %234 = vmatprep.subr.bf16.mxu1 %v261_v0 }
   0xb   :  { %235 = vmatpush3.bf16.msra.mxu1 %v255_v6 }
   0xc   :  { %236 = vmatprep.subr.bf16.mxu1 %v261_v0 }
   0xf   :  { %237 = vmatpush3.bf16.msra.mxu1 %v256_v7 }
  0x10   :  { %238 = vmatprep.subr.bf16.mxu1 %v261_v0 }
  0x13   :  { %239 = vmatpush3.bf16.msra.mxu1 %v257_v8 }
  0x14   :  { %240 = vmatprep.subr.bf16.mxu1 %v261_v0 }
  0x17   :  { %241 = vmatpush3.bf16.msra.mxu1 %v258_v9 }
  0x18   :  { %242 = vmatprep.subr.bf16.mxu1 %v261_v0 }
  0x1b   :  { %243 = vmatpush3.bf16.msra.mxu1 %v259_v10 }
  0x1c   :  { %244 = vmatprep.subr.bf16.mxu1 %v261_v0 }
  0x1f   :  { %245 = vmatpush3.bf16.msra.mxu1 %v260_v11 }
  0xc6   :  { %v76_v13 = vpop.f32.mrf.mxu0 }
  0xc7   :  { %v77_v14 = vadd.f32 %v201_v12, %v76_v13 }
  0xc8   :  { %v228_v15 = vpop.f32.mrf.mxu0 }
  0xc9   :  { %v82_v16 = vmax.f32 %v77_v14, 0.0 }
  0xca   :  { %v79_v17 = vpop.f32.mrf.mxu0 }
  0xcb   :  { %v83_v18 = vpack.c.bf16 %v82_v16, %v82_v16 }
  0xcc   :  { %v229_v19 = vpop.f32.mrf.mxu0 }
  0xcd   :  { %247 = vmatmul.mubr.bf16.vlgmr.msra.gmra.mxu1 %v83_v18 }
 0x18d   :  { %v189_v21 = vpop.f32.mrf.mxu1 }
 0x18e   :  { %v190_v22 = vadd.f32 %v204_v20, %v189_v21 }
 0x18f   :  { %v248_v23 = vpop.f32.mrf.mxu1 }
 0x190   :  { %196 = vst.msk [vmem:[%s337_s5] sm:$0xff] %vm195_vm2, %v190_v22 }
 0x191   :  { %v192_v24 = vpop.f32.mrf.mxu1 }
 0x193   :  { %v249_v25 = vpop.f32.mrf.mxu1 }

// kernel: tpu_custom_call.1
= control target key start
LH: loop header
LB: loop body
LE: loop exit
PB: predicated region body
PF: predicated region fallthrough
CT: control target
= control target key end

     0   :  { %v261_v0 = vmov 0.0   ;;  %vm262_vm0 = vmmov 0   ;;  %vm38_vm1 = vcmask 130048   ;;  %vm195_vm2 = vcmask 31744   ;;  %s332_s1 = inlined_call_operand.vmem [shape: bf16[16,128], index: 1, kind: input, shape index: {}]   ;;  %s333_s0 = inlined_call_operand.vmem [shape: f32[8,16], index: 0, kind: input, shape index: {}]   ;;  %s334_s3 = inlined_call_operand.vmem [shape: bf16[128,4], index: 3, kind: input, shape index: {}]   ;;  %s335_s2 = inlined_call_operand.vmem [shape: f32[1,128], index: 2, kind: input, shape index: {}]   ;;  %s336_s4 = inlined_call_operand.vmem [shape: f32[1,4], index: 4, kind: input, shape index: {}]   ;;  %s337_s5 = inlined_call_operand.vmem [shape: f32[8,4], index: 5, kind: output, shape index: {}]  }
   0x1   :  { %224 = vmatprep.subr.bf16.mxu0 %v261_v0  ;;  %v252_v1 = vld [vmem:[%s332_s1] sm:$0xff]   ;;  %226 = vmatprep.mubr.msk.bf16.mxu0 %vm262_vm0, %v261_v0  ;;  %v253_v4 = vld [vmem:[%s334_s3 + $0x38] sm:$0xff]   ;;  %v254_v5 = vld [vmem:[%s334_s3 + $0x30] sm:$0xff]  }
   0x2   :  { %v21_v2 = vld [vmem:[%s333_s0] sm:$0xff]  ;;  %230 = vmatprep.subr.bf16.mxu1 %v261_v0  ;;  %246 = vmatprep.mubr.msk.bf16.mxu1 %vm262_vm0, %v261_v0  ;;  %v255_v6 = vld [vmem:[%s334_s3 + $0x28] sm:$0xff]   ;;  %v257_v8 = vld [vmem:[%s334_s3 + $0x18] sm:$0xff]  }
   0x3   :  { %225 = vmatpush3.bf16.msra.mxu0 %v252_v1  ;;  %v22_v3 = vpack.c.bf16 %v21_v2, %v21_v2  ;;  %231 = vmatpush3.bf16.msra.mxu1 %v253_v4  ;;  %v256_v7 = vld [vmem:[%s334_s3 + $0x20] sm:$0xff]   ;;  %v258_v9 = vld [vmem:[%s334_s3 + $0x10] sm:$0xff]   ;;  %v259_v10 = vld [vmem:[%s334_s3 + $0x8] sm:$0xff]  }
   0x4   :  { %232 = vmatprep.subr.bf16.mxu1 %v261_v0  ;;  %v260_v11 = vld [vmem:[%s334_s3] sm:$0xff]  }
   0x5   :  { %v201_v12 = vld [vmem:[%s335_s2] ss:$0 sm:$0xff] }
   0x6   :  { %227 = vmatmul.mubr.msk.bf16.vlgmr.msra.gmra.mxu0 %vm38_vm1, %v22_v3  ;;  %v204_v20 = vld [vmem:[%s336_s4] ss:$0 sm:$0xff] }
   0x7   :  { %233 = vmatpush3.bf16.msra.mxu1 %v254_v5 }
   0x8   :  { %234 = vmatprep.subr.bf16.mxu1 %v261_v0 }
   0xb   :  { %235 = vmatpush3.bf16.msra.mxu1 %v255_v6 }
   0xc   :  { %236 = vmatprep.subr.bf16.mxu1 %v261_v0 }
   0xf   :  { %237 = vmatpush3.bf16.msra.mxu1 %v256_v7 }
  0x10   :  { %238 = vmatprep.subr.bf16.mxu1 %v261_v0 }
  0x13   :  { %239 = vmatpush3.bf16.msra.mxu1 %v257_v8 }
  0x14   :  { %240 = vmatprep.subr.bf16.mxu1 %v261_v0 }
  0x17   :  { %241 = vmatpush3.bf16.msra.mxu1 %v258_v9 }
  0x18   :  { %242 = vmatprep.subr.bf16.mxu1 %v261_v0 }
  0x1b   :  { %243 = vmatpush3.bf16.msra.mxu1 %v259_v10 }
  0x1c   :  { %244 = vmatprep.subr.bf16.mxu1 %v261_v0 }
  0x1f   :  { %245 = vmatpush3.bf16.msra.mxu1 %v260_v11 }
  0xc6   :  { %v76_v13 = vpop.f32.mrf.mxu0 }
  0xc7   :  { %v77_v14 = vadd.f32 %v201_v12, %v76_v13 }
  0xc8   :  { %v228_v15 = vpop.f32.mrf.mxu0 }
  0xc9   :  { %v82_v16 = vmax.f32 %v77_v14, 0.0 }
  0xca   :  { %v79_v17 = vpop.f32.mrf.mxu0 }
  0xcb   :  { %v83_v18 = vpack.c.bf16 %v82_v16, %v82_v16 }
  0xcc   :  { %v229_v19 = vpop.f32.mrf.mxu0 }
  0xcd   :  { %247 = vmatmul.mubr.bf16.vlgmr.msra.gmra.mxu1 %v83_v18 }
 0x18d   :  { %v189_v21 = vpop.f32.mrf.mxu1 }
 0x18e   :  { %v190_v22 = vadd.f32 %v204_v20, %v189_v21 }
 0x18f   :  { %v248_v23 = vpop.f32.mrf.mxu1 }
 0x190   :  { %196 = vst.msk [vmem:[%s337_s5] sm:$0xff] %vm195_vm2, %v190_v22 }
 0x191   :  { %v192_v24 = vpop.f32.mrf.mxu1 }
 0x193   :  { %v249_v25 = vpop.f32.mrf.mxu1 }

</bundles_post_ra>
